<compile_context>
chip_gen: v5e
topology: v5e:2x2
jax: 0.10.0
libtpu: 0.0.40
codegen_flags: <defaults>
</compile_context>

<pallas_src>
import jax
import jax.numpy as jnp
from jax.experimental import pallas as pl
from jax.experimental.pallas import tpu as pltpu

_LANE = 128
_BF16_SUBLANE = 16  # bf16 packs 16 rows per vreg sublane group


def _round_up(x: int, m: int) -> int:
    return ((x + m - 1) // m) * m


def _mlp_kernel(x_ref, w1_ref, b1_ref, w2_ref, b2_ref, out_ref):
    # hidden = relu(x @ W1 + b1)     (bf16 operands, f32 accumulate)
    h = jnp.dot(x_ref[...], w1_ref[...], preferred_element_type=jnp.float32)
    h = jnp.maximum(h + b1_ref[...], 0.0)           # (TB,Hp) + (1,Hp) broadcast
    # logits = hidden @ W2 + b2      (cast hidden back to bf16 for the MXU)
    o = jnp.dot(h.astype(w2_ref.dtype), w2_ref[...],
                preferred_element_type=jnp.float32)
    out_ref[...] = (o + b2_ref[...]).astype(out_ref.dtype)


def asym_view_pair_classifier(x, w1, b1, w2, b2, *, block_b: int = 256):
    """Fused forward pass of AsymViewPairClassifier.

    x  : (B, D_in)  float32
    w1 : (D_in, H)  float32
    b1 : (1, H)     float32
    w2 : (H, C)     float32
    b2 : (1, C)     float32
    returns logits (B, C) float32
    """
    assert x.ndim == 2, "AsymViewPairClassifier expects a 2-D input"
    B, D_in = x.shape
    H = w1.shape[1]
    C = w2.shape[1]

    # --- lane-dense zero-padding of hidden / output dims ---
    H_pad = _round_up(max(H, _LANE), _LANE)
    C_pad = _round_up(max(C, _LANE), _LANE)

    w1_p = jnp.zeros((D_in, H_pad), jnp.bfloat16).at[:, :H].set(
        w1.astype(jnp.bfloat16))
    b1_p = jnp.zeros((1, H_pad), jnp.float32).at[:, :H].set(b1)
    w2_p = jnp.zeros((H_pad, C_pad), jnp.bfloat16).at[:H, :C].set(
        w2.astype(jnp.bfloat16))
    b2_p = jnp.zeros((1, C_pad), jnp.float32).at[:, :C].set(b2)

    # --- batch tiling (multiple of 16 for bf16 sublane packing) ---
    TB = min(block_b, _round_up(B, _BF16_SUBLANE))
    TB = _round_up(TB, _BF16_SUBLANE)
    B_pad = _round_up(B, TB)

    x_p = x.astype(jnp.bfloat16)
    if B_pad != B:
        x_p = jnp.pad(x_p, ((0, B_pad - B), (0, 0)))

    grid = (B_pad // TB,)

    cost = pl.CostEstimate(
        flops=2 * B_pad * D_in * H_pad + 2 * B_pad * H_pad * C_pad,
        transcendentals=0,
        bytes_accessed=(x_p.size * 2 + w1_p.size * 2 + w2_p.size * 2
                        + b1_p.size * 4 + b2_p.size * 4
                        + B_pad * C_pad * 4),
    )

    out = pl.pallas_call(
        _mlp_kernel,
        out_shape=jax.ShapeDtypeStruct((B_pad, C_pad), jnp.float32),
        grid_spec=pl.GridSpec(
            grid=grid,
            in_specs=[
                pl.BlockSpec((TB, D_in), lambda i: (i, 0)),      # x: batch-tiled
                pl.BlockSpec((D_in, H_pad), lambda i: (0, 0)),   # W1: resident
                pl.BlockSpec((1, H_pad), lambda i: (0, 0)),      # b1: resident
                pl.BlockSpec((H_pad, C_pad), lambda i: (0, 0)),  # W2: resident
                pl.BlockSpec((1, C_pad), lambda i: (0, 0)),      # b2: resident
            ],
            out_specs=pl.BlockSpec((TB, C_pad), lambda i: (i, 0)),
        ),
        compiler_params=pltpu.CompilerParams(
            dimension_semantics=("parallel",),   # batch tiles are independent
        ),
        cost_estimate=cost,
    )(x_p, w1_p, b1_p, w2_p, b2_p)

    # Strip batch and lane padding.
    return out[:B, :C]


def _reference_f32(x, w1, b1, w2, b2):
    h = jnp.maximum(x @ w1 + b1, 0.0)
    return h @ w2 + b2


if __name__ == "__main__":
    key = jax.random.PRNGKey(0)
    k_x, k_w1, k_b1, k_w2, k_b2 = jax.random.split(key, 5)

    # Small shapes consistent with the module's 2-D forward.
    B, D_IN, H, C = 256, 64, 32, 6

    x = jax.random.normal(k_x, (B, D_IN), dtype=jnp.float32)
    # Deterministic synthetic parameters (no checkpoint loading).
    w1 = jax.random.normal(k_w1, (D_IN, H), dtype=jnp.float32) * 0.1
    b1 = jax.random.normal(k_b1, (1, H), dtype=jnp.float32) * 0.1
    w2 = jax.random.normal(k_w2, (H, C), dtype=jnp.float32) * 0.1
    b2 = jax.random.normal(k_b2, (1, C), dtype=jnp.float32) * 0.1

    out = asym_view_pair_classifier(x, w1, b1, w2, b2)
    out = jax.block_until_ready(out)

    ref = _reference_f32(x, w1, b1, w2, b2)
    assert out.shape == (B, C)
    # bf16 operands / f32 accumulate -> compare against f32 ref with bf16-level
    # tolerance (reduction widths are only D_in=64 and H=32).
    assert jnp.allclose(out, ref, atol=2e-2, rtol=2e-2), "mismatch vs reference"

    print("KERNEL_OK")
</pallas_src>

<mosaic_0001>
module attributes {stable_mosaic.version = 11 : i64} {
  func.func @_mlp_kernel(%arg0: i32, %arg1: memref<256x64xbf16, #tpu.memory_space<vmem>>, %arg2: memref<64x128xbf16, #tpu.memory_space<vmem>>, %arg3: memref<1x128xf32, #tpu.memory_space<vmem>>, %arg4: memref<128x128xbf16, #tpu.memory_space<vmem>>, %arg5: memref<1x128xf32, #tpu.memory_space<vmem>>, %arg6: memref<256x128xf32, #tpu.memory_space<vmem>>) attributes {dimension_semantics = [#tpu.dimension_semantics<parallel>], iteration_bounds = array<i64: 1>, scalar_prefetch = 0 : i64, scratch_operands = 0 : i64, tpu.core_type = #tpu.core_type<tc>, window_params = [{transform_indices = @transform_0, window_bounds = array<i64: 256, 64>}, {pipeline_mode = #tpu.pipeline_mode<synchronous>, transform_indices = @transform_1, window_bounds = array<i64: 64, 128>}, {pipeline_mode = #tpu.pipeline_mode<synchronous>, transform_indices = @transform_2, window_bounds = array<i64: 1, 128>}, {pipeline_mode = #tpu.pipeline_mode<synchronous>, transform_indices = @transform_3, window_bounds = array<i64: 128, 128>}, {pipeline_mode = #tpu.pipeline_mode<synchronous>, transform_indices = @transform_4, window_bounds = array<i64: 1, 128>}, {transform_indices = @transform_5, window_bounds = array<i64: 256, 128>}]} {
    %c0 = arith.constant 0 : index
    %c0_0 = arith.constant 0 : index
    %0 = vector.load %arg1[%c0, %c0_0] : memref<256x64xbf16, #tpu.memory_space<vmem>>, vector<256x64xbf16>
    %c0_1 = arith.constant 0 : index
    %c0_2 = arith.constant 0 : index
    %1 = vector.load %arg2[%c0_1, %c0_2] : memref<64x128xbf16, #tpu.memory_space<vmem>>, vector<64x128xbf16>
    %cst = arith.constant dense<0.000000e+00> : vector<256x128xf32>
    %2 = tpu.matmul %0, %1, %cst {dimension_numbers = #tpu.dot_dimension_numbers<[1], [0], [0], [1], [0, 0, 1, 1], [], []>} : vector<256x64xbf16>, vector<64x128xbf16>, vector<256x128xf32> -> vector<256x128xf32>
    %c0_3 = arith.constant 0 : index
    %c0_4 = arith.constant 0 : index
    %3 = vector.load %arg3[%c0_3, %c0_4] : memref<1x128xf32, #tpu.memory_space<vmem>>, vector<1x128xf32>
    %4 = vector.broadcast %3 : vector<1x128xf32> to vector<256x128xf32>
    %5 = arith.addf %2, %4 : vector<256x128xf32>
    %cst_5 = arith.constant 0.000000e+00 : f32
    %6 = vector.broadcast %cst_5 : f32 to vector<256x128xf32>
    %7 = arith.maximumf %5, %6 : vector<256x128xf32>
    %8 = arith.truncf %7 : vector<256x128xf32> to vector<256x128xbf16>
    %c0_6 = arith.constant 0 : index
    %c0_7 = arith.constant 0 : index
    %9 = vector.load %arg4[%c0_6, %c0_7] : memref<128x128xbf16, #tpu.memory_space<vmem>>, vector<128x128xbf16>
    %cst_8 = arith.constant dense<0.000000e+00> : vector<256x128xf32>
    %10 = tpu.matmul %8, %9, %cst_8 {dimension_numbers = #tpu.dot_dimension_numbers<[1], [0], [0], [1], [0, 0, 1, 1], [], []>} : vector<256x128xbf16>, vector<128x128xbf16>, vector<256x128xf32> -> vector<256x128xf32>
    %c0_9 = arith.constant 0 : index
    %c0_10 = arith.constant 0 : index
    %11 = vector.load %arg5[%c0_9, %c0_10] : memref<1x128xf32, #tpu.memory_space<vmem>>, vector<1x128xf32>
    %12 = vector.broadcast %11 : vector<1x128xf32> to vector<256x128xf32>
    %13 = arith.addf %10, %12 : vector<256x128xf32>
    %c0_11 = arith.constant 0 : index
    %c0_12 = arith.constant 0 : index
    %14 = vector.load %arg6[%c0_11, %c0_12] : memref<256x128xf32, #tpu.memory_space<vmem>>, vector<256x128xf32>
    tpu.vector_store %arg6[%c0_11, %c0_12], %13 {strides = array<i32>} : memref<256x128xf32, #tpu.memory_space<vmem>>, vector<256x128xf32>,
    return
  }
  func.func @transform_0(%arg0: i32) -> (i32, i32) {
    %c0_i32 = arith.constant 0 : i32
    %c0_i32_0 = arith.constant 0 : i32
    return %arg0, %c0_i32 : i32, i32
  }
  func.func @transform_1(%arg0: i32) -> (i32, i32) {
    %c0_i32 = arith.constant 0 : i32
    %c0_i32_0 = arith.constant 0 : i32
    %c0_i32_1 = arith.constant 0 : i32
    return %c0_i32, %c0_i32_0 : i32, i32
  }
  func.func @transform_2(%arg0: i32) -> (i32, i32) {
    %c0_i32 = arith.constant 0 : i32
    %c0_i32_0 = arith.constant 0 : i32
    %c0_i32_1 = arith.constant 0 : i32
    return %c0_i32, %c0_i32_0 : i32, i32
  }
  func.func @transform_3(%arg0: i32) -> (i32, i32) {
    %c0_i32 = arith.constant 0 : i32
    %c0_i32_0 = arith.constant 0 : i32
    %c0_i32_1 = arith.constant 0 : i32
    return %c0_i32, %c0_i32_0 : i32, i32
  }
  func.func @transform_4(%arg0: i32) -> (i32, i32) {
    %c0_i32 = arith.constant 0 : i32
    %c0_i32_0 = arith.constant 0 : i32
    %c0_i32_1 = arith.constant 0 : i32
    return %c0_i32, %c0_i32_0 : i32, i32
  }
  func.func @transform_5(%arg0: i32) -> (i32, i32) {
    %c0_i32 = arith.constant 0 : i32
    %c0_i32_0 = arith.constant 0 : i32
    return %arg0, %c0_i32 : i32, i32
  }
}

</mosaic_0001>

<bundles_post_ra>
// kernel: tpu_custom_call.1
= control target key start
LH: loop header
LB: loop body
LE: loop exit
PB: predicated region body
PF: predicated region fallthrough
CT: control target
= control target key end

     0   :  { %s972_s0 = inlined_call_operand.vmem [shape: bf16[256,64], index: 0, kind: input, shape index: {}]   ;;  %s973_s1 = inlined_call_operand.vmem [shape: bf16[64,128], index: 1, kind: input, shape index: {}]   ;;  %s974_s2 = inlined_call_operand.vmem [shape: f32[1,128], index: 2, kind: input, shape index: {}]   ;;  %s975_s3 = inlined_call_operand.vmem [shape: bf16[128,128], index: 3, kind: input, shape index: {}]   ;;  %s976_s4 = inlined_call_operand.vmem [shape: f32[1,128], index: 4, kind: input, shape index: {}]   ;;  %s977_s5 = inlined_call_operand.hbm [shape: f32[256,128], index: 5, kind: output, shape index: {}]  }
   0x1   :  { %v710_v0 = vld [vmem:[%s973_s1 + $0x18] sm:$0xff]  ;;  %v709_v1 = vld [vmem:[%s973_s1 + $0x10] sm:$0xff] }
   0x2   :  { %223 = vmatpush.bf16.msra.mxu0 %v710_v0  ;;  %719 = vmatpush.bf16.msra.mxu3 %v710_v0 }
   0x3   :  { %10 = vsyncpa [#allocation3], 0  ;;  %v708_v2 = vld [vmem:[%s973_s1 + $0x8] sm:$0xff]  ;;  %v707_v3 = vld [vmem:[%s973_s1] sm:$0xff]  ;;  %vm170_vm0 = vcmask 523264   ;;  %s551_s26 = sshll.u32 %s977_s5, 4  ;;  %s552_s26 = int_to_ptr.hbm [resolvable:$true] %s551_s26 }
   0x4   :  { %v691_v4 = vld [vmem:[%s972_s0] sm:$0xff]  ;;  %v692_v5 = vld [vmem:[%s972_s0 + $0x8] sm:$0xff]  ;;  %v693_v6 = vld [vmem:[%s972_s0 + $0x10] sm:$0xff]  ;;  %s763_s27 = smov 128   ;;  %s764_s28 = smov 8  }
   0x5   :  { %v694_v7 = vld [vmem:[%s972_s0 + $0x18] sm:$0xff]  ;;  %v695_v8 = vld [vmem:[%s972_s0 + $0x20] sm:$0xff]  ;;  %v696_v10 = vld [vmem:[%s972_s0 + $0x28] sm:$0xff] }
   0x6   :  { %224 = vmatpush.bf16.msra.mxu0 %v709_v1  ;;  %720 = vmatpush.bf16.msra.mxu3 %v709_v1  ;;  %v718_v9 = vld [vmem:[%s975_s3 + $0x38] sm:$0xff]  ;;  %v717_v11 = vld [vmem:[%s975_s3 + $0x30] sm:$0xff]  ;;  %v716_v12 = vld [vmem:[%s975_s3 + $0x28] sm:$0xff] }
   0x7   :  { %424 = vmatpush.bf16.msra.mxu1 %v718_v9  ;;  %723 = vmatpush.bf16.msra.mxu2 %v718_v9  ;;  %v715_v13 = vld [vmem:[%s975_s3 + $0x20] sm:$0xff]  ;;  %v714_v14 = vld [vmem:[%s975_s3 + $0x18] sm:$0xff]  ;;  %v697_v15 = vld [vmem:[%s972_s0 + $0x30] sm:$0xff] }
   0x8   :  { %v713_v16 = vld [vmem:[%s975_s3 + $0x10] sm:$0xff]  ;;  %v700_v17 = vld [vmem:[%s972_s0 + $0x48] sm:$0xff]  ;;  %v711_v19 = vld [vmem:[%s975_s3] sm:$0xff] }
   0x9   :  { %v712_v18 = vld [vmem:[%s975_s3 + $0x8] sm:$0xff]  ;;  %v698_v20 = vld [vmem:[%s972_s0 + $0x38] sm:$0xff]  ;;  %v701_v21 = vld [vmem:[%s972_s0 + $0x50] sm:$0xff] }
   0xa   :  { %225 = vmatpush.bf16.msra.mxu0 %v708_v2  ;;  %721 = vmatpush.bf16.msra.mxu3 %v708_v2  ;;  %v699_v22 = vld [vmem:[%s972_s0 + $0x40] sm:$0xff]  ;;  %v702_v25 = vld [vmem:[%s972_s0 + $0x58] sm:$0xff]  ;;  %v704_v41 = vld [vmem:[%s972_s0 + $0x68] sm:$0xff] }
   0xb   :  { %425 = vmatpush.bf16.msra.mxu1 %v717_v11  ;;  %724 = vmatpush.bf16.msra.mxu2 %v717_v11  ;;  %v877_v24 = vld [vmem:[%s974_s2] ss:$0 sm:$0xff]  ;;  %v705_v49 = vld [vmem:[%s972_s0 + $0x70] sm:$0xff]  ;;  %v706_v57 = vld [vmem:[%s972_s0 + $0x78] sm:$0xff] }
   0xc   :  { %v703_v33 = vld [vmem:[%s972_s0 + $0x60] sm:$0xff] }
   0xe   :  { %226 = vmatpush.bf16.msra.mxu0 %v707_v3  ;;  %722 = vmatpush.bf16.msra.mxu3 %v707_v3 }
   0xf   :  { %426 = vmatpush.bf16.msra.mxu1 %v716_v12  ;;  %725 = vmatpush.bf16.msra.mxu2 %v716_v12 }
  0x11   :  { %643 = vmatmul.msk.bf16.vlgmr.msra.gmra.mxu0 %vm170_vm0, %v691_v4  ;;  %652 = vmatmul.msk.bf16.vlgmr.msra.gmra.mxu3 %vm170_vm0, %v700_v17 }
  0x13   :  { %427 = vmatpush.bf16.msra.mxu1 %v715_v13  ;;  %726 = vmatpush.bf16.msra.mxu2 %v715_v13 }
  0x17   :  { %428 = vmatpush.bf16.msra.mxu1 %v714_v14  ;;  %727 = vmatpush.bf16.msra.mxu2 %v714_v14 }
  0x1b   :  { %429 = vmatpush.bf16.msra.mxu1 %v713_v16  ;;  %728 = vmatpush.bf16.msra.mxu2 %v713_v16 }
  0x1f   :  { %430 = vmatpush.bf16.msra.mxu1 %v712_v18  ;;  %729 = vmatpush.bf16.msra.mxu2 %v712_v18 }
  0x21   :  { %644 = vmatmul.msk.bf16.gmra.mxu0 %vm170_vm0, %v692_v5  ;;  %653 = vmatmul.msk.bf16.gmra.mxu3 %vm170_vm0, %v701_v21 }
  0x23   :  { %431 = vmatpush.bf16.msra.mxu1 %v711_v19  ;;  %730 = vmatpush.bf16.msra.mxu2 %v711_v19 }
  0x31   :  { %645 = vmatmul.msk.bf16.gmra.mxu0 %vm170_vm0, %v693_v6  ;;  %654 = vmatmul.msk.bf16.gmra.mxu3 %vm170_vm0, %v702_v25 }
  0x41   :  { %646 = vmatmul.msk.bf16.gmra.mxu0 %vm170_vm0, %v694_v7  ;;  %655 = vmatmul.msk.bf16.gmra.mxu3 %vm170_vm0, %v703_v33 }
  0x51   :  { %647 = vmatmul.msk.bf16.gmra.mxu0 %vm170_vm0, %v695_v8  ;;  %656 = vmatmul.msk.bf16.gmra.mxu3 %vm170_vm0, %v704_v41 }
  0x61   :  { %648 = vmatmul.msk.bf16.gmra.mxu0 %vm170_vm0, %v696_v10  ;;  %657 = vmatmul.msk.bf16.gmra.mxu3 %vm170_vm0, %v705_v49 }
  0x71   :  { %649 = vmatmul.msk.bf16.gmra.mxu0 %vm170_vm0, %v697_v15  ;;  %658 = vmatmul.msk.bf16.gmra.mxu3 %vm170_vm0, %v706_v57 }
  0x81   :  { %650 = vmatmul.msk.bf16.gmra.mxu0 %vm170_vm0, %v698_v20 }
  0x8e   :  { %v228_v23 = vpop.f32.mrf.mxu0 }
  0x8f   :  { %v229_v26 = vadd.f32 %v877_v24, %v228_v23 }
  0x91   :  { %651 = vmatmul.msk.bf16.gmra.mxu0 %vm170_vm0, %v699_v22  ;;  %v308_v29 = vmax.f32 %v229_v26, 0.0 }
  0x94   :  { %v273_v15 = vpop.f32.mrf.mxu3 }
  0x96   :  { %v230_v27 = vpop.f32.mrf.mxu0 }
  0x97   :  { %v231_v28 = vadd.f32 %v877_v24, %v230_v27 }
  0x99   :  { %v309_v30 = vmax.f32 %v231_v28, 0.0 }
  0x9b   :  { %v340_v31 = vpack.c.bf16 %v309_v30, %v308_v29  ;;  %v921_v29 = vld [vmem:[%s976_s4] ss:$0 sm:$0xff]  ;;  %s762_s4 = smov [#allocation2]  }
  0x9c   :  { %v275_v19 = vpop.f32.mrf.mxu3  ;;  %s549_s23 = sshll.u32 %s762_s4, 4  ;;  %s550_s23 = int_to_ptr.vmem [resolvable:$true] %s549_s23 }
  0x9d   :  { %432 = vmatmul.bf16.vlgmr.msra.gmra.mxu1 %v340_v31 }
  0x9e   :  { %v233_v32 = vpop.f32.mrf.mxu0 }
  0x9f   :  { %v234_v34 = vadd.f32 %v877_v24, %v233_v32 }
  0xa1   :  { %v310_v37 = vmax.f32 %v234_v34, 0.0 }
  0xa4   :  { %v278_v25 = vpop.f32.mrf.mxu3 }
  0xa6   :  { %v235_v35 = vpop.f32.mrf.mxu0 }
  0xa7   :  { %v236_v36 = vadd.f32 %v877_v24, %v235_v35 }
  0xa9   :  { %v311_v38 = vmax.f32 %v236_v36, 0.0 }
  0xab   :  { %v341_v39 = vpack.c.bf16 %v311_v38, %v310_v37  ;;  %v274_v37 = vadd.f32 %v877_v24, %v273_v15  ;;  %v276_v38 = vadd.f32 %v877_v24, %v275_v19 }
  0xac   :  { %v280_v35 = vpop.f32.mrf.mxu3 }
  0xad   :  { %437 = vmatmul.bf16.gmra.mxu1 %v341_v39  ;;  %v326_v41 = vmax.f32 %v274_v37, 0.0  ;;  %v281_v49 = vadd.f32 %v877_v24, %v280_v35 }
  0xae   :  { %v238_v40 = vpop.f32.mrf.mxu0 }
  0xaf   :  { %v239_v42 = vadd.f32 %v877_v24, %v238_v40 }
  0xb1   :  { %v312_v45 = vmax.f32 %v239_v42, 0.0  ;;  %v327_v42 = vmax.f32 %v276_v38, 0.0 }
  0xb4   :  { %v283_v40 = vpop.f32.mrf.mxu3 }
  0xb6   :  { %v240_v43 = vpop.f32.mrf.mxu0 }
  0xb7   :  { %v241_v44 = vadd.f32 %v877_v24, %v240_v43 }
  0xb9   :  { %v313_v46 = vmax.f32 %v241_v44, 0.0 }
  0xbb   :  { %v342_v47 = vpack.c.bf16 %v313_v46, %v312_v45  ;;  %v349_v45 = vpack.c.bf16 %v327_v42, %v326_v41 }
  0xbc   :  { %v285_v46 = vpop.f32.mrf.mxu3 }
  0xbd   :  { %442 = vmatmul.bf16.gmra.mxu1 %v342_v47 }
  0xbe   :  { %v243_v48 = vpop.f32.mrf.mxu0 }
  0xbf   :  { %v244_v50 = vadd.f32 %v877_v24, %v243_v48  ;;  %v279_v48 = vadd.f32 %v877_v24, %v278_v25 }
  0xc1   :  { %v314_v53 = vmax.f32 %v244_v50, 0.0 }
  0xc6   :  { %v245_v51 = vpop.f32.mrf.mxu0 }
  0xc7   :  { %v246_v52 = vadd.f32 %v877_v24, %v245_v51  ;;  %v328_v51 = vmax.f32 %v279_v48, 0.0 }
  0xc9   :  { %v315_v54 = vmax.f32 %v246_v52, 0.0  ;;  %v329_v52 = vmax.f32 %v281_v49, 0.0 }
  0xcb   :  { %v343_v55 = vpack.c.bf16 %v315_v54, %v314_v53  ;;  %v288_v54 = vpop.f32.mrf.mxu3 }
  0xcd   :  { %447 = vmatmul.bf16.gmra.mxu1 %v343_v55 }
  0xce   :  { %v248_v56 = vpop.f32.mrf.mxu0 }
  0xcf   :  { %v249_v58 = vadd.f32 %v877_v24, %v248_v56  ;;  %v350_v56 = vpack.c.bf16 %v329_v52, %v328_v51 }
  0xd1   :  { %v316_v61 = vmax.f32 %v249_v58, 0.0  ;;  %v284_v58 = vadd.f32 %v877_v24, %v283_v40 }
  0xd6   :  { %v250_v59 = vpop.f32.mrf.mxu0 }
  0xd7   :  { %v251_v60 = vadd.f32 %v877_v24, %v250_v59  ;;  %v286_v59 = vadd.f32 %v877_v24, %v285_v46 }
  0xd9   :  { %v317_v62 = vmax.f32 %v251_v60, 0.0 }
  0xdb   :  { %v344_v63 = vpack.c.bf16 %v317_v62, %v316_v61  ;;  %v290_v61 = vpop.f32.mrf.mxu3  ;;  %v330_v62 = vmax.f32 %v284_v58, 0.0 }
  0xdd   :  { %452 = vmatmul.bf16.gmra.mxu1 %v344_v63  ;;  %v331_v63 = vmax.f32 %v286_v59, 0.0 }
  0xde   :  { %v253_v0 = vpop.f32.mrf.mxu0 }
  0xdf   :  { %v254_v1 = vadd.f32 %v877_v24, %v253_v0 }
  0xe1   :  { %v318_v4 = vmax.f32 %v254_v1, 0.0 }
  0xe6   :  { %v255_v2 = vpop.f32.mrf.mxu0 }
  0xe7   :  { %v256_v3 = vadd.f32 %v877_v24, %v255_v2  ;;  %v351_v2 = vpack.c.bf16 %v331_v63, %v330_v62 }
  0xe9   :  { %v319_v5 = vmax.f32 %v256_v3, 0.0  ;;  %v293_v3 = vpop.f32.mrf.mxu3 }
  0xeb   :  { %v345_v6 = vpack.c.bf16 %v319_v5, %v318_v4  ;;  %v289_v5 = vadd.f32 %v877_v24, %v288_v54 }
  0xed   :  { %457 = vmatmul.bf16.gmra.mxu1 %v345_v6  ;;  %v291_v6 = vadd.f32 %v877_v24, %v290_v61 }
  0xee   :  { %v258_v7 = vpop.f32.mrf.mxu0 }
  0xef   :  { %v259_v8 = vadd.f32 %v877_v24, %v258_v7 }
  0xf1   :  { %v320_v11 = vmax.f32 %v259_v8, 0.0  ;;  %v332_v8 = vmax.f32 %v289_v5, 0.0 }
  0xf6   :  { %v260_v9 = vpop.f32.mrf.mxu0 }
  0xf7   :  { %v261_v10 = vadd.f32 %v877_v24, %v260_v9  ;;  %v333_v9 = vmax.f32 %v291_v6, 0.0 }
  0xf9   :  { %v321_v12 = vmax.f32 %v261_v10, 0.0  ;;  %v295_v10 = vpop.f32.mrf.mxu3 }
  0xfb   :  { %v346_v13 = vpack.c.bf16 %v321_v12, %v320_v11 }
  0xfd   :  { %462 = vmatmul.bf16.gmra.mxu1 %v346_v13  ;;  %v352_v13 = vpack.c.bf16 %v333_v9, %v332_v8 }
  0xfe   :  { %v263_v14 = vpop.f32.mrf.mxu0 }
  0xff   :  { %v264_v16 = vadd.f32 %v877_v24, %v263_v14 }
 0x101   :  { %v322_v20 = vmax.f32 %v264_v16, 0.0  ;;  %v298_v15 = vpop.f32.mrf.mxu3  ;;  %v294_v16 = vadd.f32 %v877_v24, %v293_v3 }
 0x103   :  { %v334_v19 = vmax.f32 %v294_v16, 0.0 }
 0x106   :  { %v265_v17 = vpop.f32.mrf.mxu0 }
 0x107   :  { %v266_v18 = vadd.f32 %v877_v24, %v265_v17  ;;  %v296_v17 = vadd.f32 %v877_v24, %v295_v10 }
 0x109   :  { %v323_v21 = vmax.f32 %v266_v18, 0.0  ;;  %v300_v25 = vpop.f32.mrf.mxu3 }
 0x10b   :  { %v347_v22 = vpack.c.bf16 %v323_v21, %v322_v20  ;;  %v335_v20 = vmax.f32 %v296_v17, 0.0 }
 0x10d   :  { %467 = vmatmul.bf16.gmra.mxu1 %v347_v22 }
 0x10e   :  { %v268_v23 = vpop.f32.mrf.mxu0 }
 0x10f   :  { %v269_v26 = vadd.f32 %v877_v24, %v268_v23  ;;  %v353_v23 = vpack.c.bf16 %v335_v20, %v334_v19 }
 0x111   :  { %v324_v30 = vmax.f32 %v269_v26, 0.0 }
 0x116   :  { %v270_v27 = vpop.f32.mrf.mxu0 }
 0x117   :  { %v271_v28 = vadd.f32 %v877_v24, %v270_v27  ;;  %v299_v27 = vadd.f32 %v877_v24, %v298_v15 }
 0x119   :  { %v325_v31 = vmax.f32 %v271_v28, 0.0  ;;  %v301_v28 = vadd.f32 %v877_v24, %v300_v25 }
 0x11a   :  { %v433_v32 = vpop.f32.mrf.mxu1 }
 0x11b   :  { %v434_v33 = vadd.f32 %v921_v29, %v433_v32  ;;  %v348_v34 = vpack.c.bf16 %v325_v31, %v324_v30  ;;  %v303_v31 = vpop.f32.mrf.mxu3  ;;  %v336_v32 = vmax.f32 %v299_v27, 0.0 }
 0x11d   :  { %513 = vst [vmem:[#allocation2] sm:$0xff] %v434_v33  ;;  %472 = vmatmul.bf16.vlgmr.msra.gmra.mxu2 %v348_v34  ;;  %v337_v33 = vmax.f32 %v301_v28, 0.0 }
 0x122   :  { %v435_v36 = vpop.f32.mrf.mxu1 }
 0x123   :  { %v436_v39 = vadd.f32 %v921_v29, %v435_v36  ;;  %v354_v36 = vpack.c.bf16 %v337_v33, %v336_v32  ;;  %v305_v37 = vpop.f32.mrf.mxu3 }
 0x124   :  { %v306_v40 = vadd.f32 %v877_v24, %v305_v37 }
 0x125   :  { %514 = vst [vmem:[#allocation2 + $0x8] sm:$0xff] %v436_v39  ;;  %v304_v39 = vadd.f32 %v877_v24, %v303_v31 }
 0x127   :  { %v338_v42 = vmax.f32 %v304_v39, 0.0 }
 0x12a   :  { %v438_v43 = vpop.f32.mrf.mxu1 }
 0x12b   :  { %v439_v44 = vadd.f32 %v921_v29, %v438_v43  ;;  %v339_v43 = vmax.f32 %v306_v40, 0.0 }
 0x12d   :  { %515 = vst [vmem:[#allocation2 + $0x10] sm:$0xff] %v439_v44  ;;  %477 = vmatmul.bf16.gmra.mxu2 %v349_v45  ;;  %v355_v46 = vpack.c.bf16 %v339_v43, %v338_v42 }
 0x132   :  { %v440_v47 = vpop.f32.mrf.mxu1 }
 0x133   :  { %v441_v50 = vadd.f32 %v921_v29, %v440_v47 }
 0x135   :  { %516 = vst [vmem:[#allocation2 + $0x18] sm:$0xff] %v441_v50 }
 0x13a   :  { %v443_v53 = vpop.f32.mrf.mxu1 }
 0x13b   :  { %v444_v55 = vadd.f32 %v921_v29, %v443_v53 }
 0x13d   :  { %517 = vst [vmem:[#allocation2 + $0x20] sm:$0xff] %v444_v55  ;;  %482 = vmatmul.bf16.gmra.mxu2 %v350_v56 }
 0x142   :  { %v445_v57 = vpop.f32.mrf.mxu1 }
 0x143   :  { %v446_v60 = vadd.f32 %v921_v29, %v445_v57 }
 0x145   :  { %518 = vst [vmem:[#allocation2 + $0x28] sm:$0xff] %v446_v60 }
 0x14a   :  { %v448_v0 = vpop.f32.mrf.mxu1 }
 0x14b   :  { %v449_v1 = vadd.f32 %v921_v29, %v448_v0 }
 0x14d   :  { %519 = vst [vmem:[#allocation2 + $0x30] sm:$0xff] %v449_v1  ;;  %487 = vmatmul.bf16.gmra.mxu2 %v351_v2 }
 0x152   :  { %v450_v4 = vpop.f32.mrf.mxu1 }
 0x153   :  { %v451_v7 = vadd.f32 %v921_v29, %v450_v4 }
 0x155   :  { %520 = vst [vmem:[#allocation2 + $0x38] sm:$0xff] %v451_v7 }
 0x15a   :  { %v453_v11 = vpop.f32.mrf.mxu1 }
 0x15b   :  { %v454_v12 = vadd.f32 %v921_v29, %v453_v11 }
 0x15d   :  { %521 = vst [vmem:[#allocation2 + $0x40] sm:$0xff] %v454_v12  ;;  %492 = vmatmul.bf16.gmra.mxu2 %v352_v13 }
 0x162   :  { %v455_v14 = vpop.f32.mrf.mxu1 }
 0x163   :  { %v456_v18 = vadd.f32 %v921_v29, %v455_v14 }
 0x165   :  { %522 = vst [vmem:[#allocation2 + $0x48] sm:$0xff] %v456_v18 }
 0x16a   :  { %v458_v21 = vpop.f32.mrf.mxu1 }
 0x16b   :  { %v459_v22 = vadd.f32 %v921_v29, %v458_v21 }
 0x16d   :  { %523 = vst [vmem:[#allocation2 + $0x50] sm:$0xff] %v459_v22  ;;  %497 = vmatmul.bf16.gmra.mxu2 %v353_v23 }
 0x172   :  { %v460_v26 = vpop.f32.mrf.mxu1 }
 0x173   :  { %v461_v30 = vadd.f32 %v921_v29, %v460_v26 }
 0x175   :  { %524 = vst [vmem:[#allocation2 + $0x58] sm:$0xff] %v461_v30 }
 0x17a   :  { %v463_v34 = vpop.f32.mrf.mxu1 }
 0x17b   :  { %v464_v35 = vadd.f32 %v921_v29, %v463_v34 }
 0x17d   :  { %525 = vst [vmem:[#allocation2 + $0x60] sm:$0xff] %v464_v35  ;;  %502 = vmatmul.bf16.gmra.mxu2 %v354_v36 }
 0x182   :  { %v465_v38 = vpop.f32.mrf.mxu1 }
 0x183   :  { %v466_v41 = vadd.f32 %v921_v29, %v465_v38 }
 0x185   :  { %526 = vst [vmem:[#allocation2 + $0x68] sm:$0xff] %v466_v41 }
 0x18a   :  { %v468_v44 = vpop.f32.mrf.mxu1 }
 0x18b   :  { %v469_v45 = vadd.f32 %v921_v29, %v468_v44 }
 0x18d   :  { %527 = vst [vmem:[#allocation2 + $0x70] sm:$0xff] %v469_v45  ;;  %507 = vmatmul.bf16.gmra.mxu2 %v355_v46 }
 0x192   :  { %v470_v47 = vpop.f32.mrf.mxu1 }
 0x193   :  { %v471_v48 = vadd.f32 %v921_v29, %v470_v47 }
 0x195   :  { %528 = vst [vmem:[#allocation2 + $0x78] sm:$0xff] %v471_v48 }
 0x1a0   :  { %v473_v49 = vpop.f32.mrf.mxu2 }
 0x1a1   :  { %v474_v50 = vadd.f32 %v921_v29, %v473_v49 }
 0x1a3   :  { %529 = vst [vmem:[#allocation2 + $0x80] sm:$0xff] %v474_v50 }
 0x1a8   :  { %v475_v24 = vpop.f32.mrf.mxu2 }
 0x1a9   :  { %v476_v51 = vadd.f32 %v921_v29, %v475_v24 }
 0x1ab   :  { %530 = vst [vmem:[#allocation2 + $0x88] sm:$0xff] %v476_v51 }
 0x1b0   :  { %v478_v52 = vpop.f32.mrf.mxu2 }
 0x1b1   :  { %v479_v53 = vadd.f32 %v921_v29, %v478_v52 }
 0x1b3   :  { %531 = vst [vmem:[#allocation2 + $0x90] sm:$0xff] %v479_v53 }
 0x1b8   :  { %v480_v54 = vpop.f32.mrf.mxu2 }
 0x1b9   :  { %v481_v55 = vadd.f32 %v921_v29, %v480_v54 }
 0x1bb   :  { %532 = vst [vmem:[#allocation2 + $0x98] sm:$0xff] %v481_v55 }
 0x1c0   :  { %v483_v56 = vpop.f32.mrf.mxu2 }
 0x1c1   :  { %v484_v57 = vadd.f32 %v921_v29, %v483_v56 }
 0x1c3   :  { %533 = vst [vmem:[#allocation2 + $0xa0] sm:$0xff] %v484_v57 }
 0x1c8   :  { %v485_v58 = vpop.f32.mrf.mxu2 }
 0x1c9   :  { %v486_v59 = vadd.f32 %v921_v29, %v485_v58 }
 0x1cb   :  { %534 = vst [vmem:[#allocation2 + $0xa8] sm:$0xff] %v486_v59 }
 0x1d0   :  { %v488_v60 = vpop.f32.mrf.mxu2 }
 0x1d1   :  { %v489_v61 = vadd.f32 %v921_v29, %v488_v60 }
 0x1d3   :  { %535 = vst [vmem:[#allocation2 + $0xb0] sm:$0xff] %v489_v61 }
 0x1d8   :  { %v490_v62 = vpop.f32.mrf.mxu2 }
 0x1d9   :  { %v491_v63 = vadd.f32 %v921_v29, %v490_v62 }
 0x1db   :  { %536 = vst [vmem:[#allocation2 + $0xb8] sm:$0xff] %v491_v63 }
 0x1e0   :  { %v493_v0 = vpop.f32.mrf.mxu2 }
 0x1e1   :  { %v494_v1 = vadd.f32 %v921_v29, %v493_v0 }
 0x1e3   :  { %537 = vst [vmem:[#allocation2 + $0xc0] sm:$0xff] %v494_v1 }
 0x1e8   :  { %v495_v2 = vpop.f32.mrf.mxu2 }
 0x1e9   :  { %v496_v3 = vadd.f32 %v921_v29, %v495_v2 }
 0x1eb   :  { %538 = vst [vmem:[#allocation2 + $0xc8] sm:$0xff] %v496_v3 }
 0x1f0   :  { %v498_v4 = vpop.f32.mrf.mxu2 }
 0x1f1   :  { %v499_v5 = vadd.f32 %v921_v29, %v498_v4 }
 0x1f3   :  { %539 = vst [vmem:[#allocation2 + $0xd0] sm:$0xff] %v499_v5 }
 0x1f8   :  { %v500_v6 = vpop.f32.mrf.mxu2 }
 0x1f9   :  { %v501_v7 = vadd.f32 %v921_v29, %v500_v6 }
 0x1fb   :  { %540 = vst [vmem:[#allocation2 + $0xd8] sm:$0xff] %v501_v7 }
 0x200   :  { %v503_v8 = vpop.f32.mrf.mxu2 }
 0x201   :  { %v504_v9 = vadd.f32 %v921_v29, %v503_v8 }
 0x203   :  { %541 = vst [vmem:[#allocation2 + $0xe0] sm:$0xff] %v504_v9 }
 0x208   :  { %v505_v10 = vpop.f32.mrf.mxu2 }
 0x209   :  { %v506_v11 = vadd.f32 %v921_v29, %v505_v10 }
 0x20b   :  { %542 = vst [vmem:[#allocation2 + $0xe8] sm:$0xff] %v506_v11 }
 0x210   :  { %v508_v12 = vpop.f32.mrf.mxu2 }
 0x211   :  { %v509_v13 = vadd.f32 %v921_v29, %v508_v12 }
 0x213   :  { %543 = vst [vmem:[#allocation2 + $0xf0] sm:$0xff] %v509_v13 }
 0x218   :  { %v510_v14 = vpop.f32.mrf.mxu2 }
 0x219   :  { %v511_v15 = vadd.f32 %v921_v29, %v510_v14 }
 0x21b   :  { %544 = vst [vmem:[#allocation2 + $0xf8] sm:$0xff] %v511_v15 }
 0x21c   :  { %557 = dma.vmem_to_hbm [thread:$0]  %s550_s23, 4096, %s552_s26, [#allocation3], %s763_s27, %s763_s27, %s764_s28  }
 0x21d   :  { %760 = dma.done.wait [#allocation3], 4096  }
 0x21e   :  { %761 = vsyncadd [#allocation3], 4294963200 }
 0x21f   :  { %562 = vsyncpa [#allocation3], 1 }

</bundles_post_ra>
